<compile_context>
chip_gen: v7x
topology: tpu7x:2x2x1
jax: 0.10.0
libtpu: 0.0.40
codegen_flags: <defaults>
</compile_context>

<pallas_src>
import functools
import math

import jax
import jax.numpy as jnp
import numpy as np
from jax.experimental import pallas as pl
from jax.experimental.pallas import tpu as pltpu


def _sine_pe_kernel(alpha_ref, x_ref, pe_ref, out_ref, *, x_scale):
    # alpha_ref: (1,)        f32 in SMEM  (learnable scalar parameter)
    # x_ref:     (ts, dim_p) in VMEM      (batch dim squeezed by BlockSpec)
    # pe_ref:    (ts, dim_p) in VMEM      (positional table slab for this tile)
    # out_ref:   (ts, dim_p) in VMEM      (lane-dense: dim_p is the lane axis)
    a = alpha_ref[0]                           # hoisted scalar SMEM read
    x = x_ref[...].astype(jnp.float32)         # compute in f32, cast once at store
    if x_scale != 1.0:                         # static python const -> folded at trace
        x = x * x_scale
    pe = pe_ref[...].astype(jnp.float32)
    out_ref[...] = (x + a * pe).astype(out_ref.dtype)


@functools.lru_cache(maxsize=None)
def _cached_pe(seq_len, dim, dtype_name, reverse):
    """Interleaved sin/cos table, identical to extend_pe(); built once, cached."""
    if reverse:
        position = np.arange(seq_len - 1, -1, -1, dtype=np.float32)[:, None]
    else:
        position = np.arange(seq_len, dtype=np.float32)[:, None]
    div_term = np.exp(
        np.arange(0, dim, 2, dtype=np.float32) * (-math.log(10000.0) / dim))
    ang = position * div_term                               # (seq_len, dim//2)
    # stack+reshape interleaves: pe[:,0::2]=sin, pe[:,1::2]=cos
    pe = np.stack([np.sin(ang), np.cos(ang)], axis=-1).reshape(seq_len, dim)
    return jnp.asarray(pe, dtype=dtype_name)                # device buffer, cached


def _round_up(x, m):
    return (x + m - 1) // m * m


def _pick_seq_tile(seq_len, dim, itemsize, bs, target_bytes=4 << 20):
    """Dtype-aware seq tile: multiple of the native sublane pack, ~target_bytes,
    independent of seq_len factorization (ragged last block is fine)."""
    pack = max(8, 32 // itemsize)              # f32: 8, bf16: 16, int8/fp8: 32
    max_rows = max(pack, (target_bytes // (itemsize * dim)) // pack * pack)
    ts = min(max_rows, _round_up(seq_len, pack))
    # Keep >=2 grid steps so both v7x TensorCores get work (neutral on v5e/v6e).
    if bs * pl.cdiv(seq_len, ts) < 2 and seq_len > pack:
        ts = _round_up(pl.cdiv(seq_len, 2), pack)
    return ts


def sine_positional_embedding(x, alpha, *, x_scale=1.0, pe=None, reverse=False):
    """x: (bs, seq_len, dim); alpha: scalar parameter array (shape () or (1,))."""
    if x.ndim != 3:
        raise NotImplementedError("expected x of shape (bs, seq_len, dim)")
    bs, seq_len, dim = x.shape

    if pe is None:
        pe = _cached_pe(seq_len, dim, jnp.dtype(x.dtype).name, reverse)
    else:
        assert pe.shape[0] >= seq_len, (
            f"pe has {pe.shape[0]} rows, need >= seq_len={seq_len}")
        pe = pe[:seq_len].astype(x.dtype)

    alpha = jnp.asarray(alpha, dtype=jnp.float32).reshape((1,))

    # Lane-density guard: pad dim to a multiple of 128 (no-op for dim = 128*k).
    dim_p = _round_up(dim, 128)
    if dim_p != dim:
        x_in = jnp.pad(x, ((0, 0), (0, 0), (0, dim_p - dim)))
        pe_in = jnp.pad(pe, ((0, 0), (0, dim_p - dim)))
    else:
        x_in, pe_in = x, pe

    itemsize = jnp.dtype(x.dtype).itemsize
    ts = _pick_seq_tile(seq_len, dim_p, itemsize, bs)
    num_s_tiles = pl.cdiv(seq_len, ts)

    kernel = functools.partial(_sine_pe_kernel, x_scale=float(x_scale))

    out = pl.pallas_call(
        kernel,
        out_shape=jax.ShapeDtypeStruct((bs, seq_len, dim_p), x.dtype),
        grid_spec=pltpu.PrefetchScalarGridSpec(
            num_scalar_prefetch=0,
            # batch innermost: pe block index is constant across it -> no re-DMA.
            grid=(num_s_tiles, bs),
            in_specs=[
                # alpha scalar parameter, whole array in SMEM (f32)
                pl.BlockSpec(memory_space=pltpu.MemorySpace.SMEM),
                # x tile: (1, ts, dim_p) with batch squeezed -> kernel sees (ts, dim_p)
                pl.BlockSpec((None, ts, dim_p), lambda s, b: (b, s, 0)),
                # pe tile: (ts, dim_p), shared across the batch axis
                pl.BlockSpec((ts, dim_p), lambda s, b: (s, 0)),
            ],
            out_specs=pl.BlockSpec((None, ts, dim_p), lambda s, b: (b, s, 0)),
        ),
        compiler_params=pltpu.CompilerParams(
            dimension_semantics=("parallel", "parallel"),
            # 3 arrays x 2 buffers x ~4 MiB tiles + headroom; fits v7x's 64 MiB VMEM.
            vmem_limit_bytes=48 * 1024 * 1024),
    )(alpha, x_in, pe_in)

    if dim_p != dim:
        out = out[..., :dim]
    return out


if __name__ == "__main__":
    # --- Test 1: canonical shapes, f32, scale=True -------------------------
    dim_model = 128
    bs, seq_len = 2, 8
    x_scale = math.sqrt(dim_model)                 # scale=True path

    key = jax.random.PRNGKey(0)
    x = jax.random.normal(key, (bs, seq_len, dim_model), dtype=jnp.float32)
    alpha = jnp.ones((1,), dtype=jnp.float32)      # nn.Parameter(torch.ones(1))

    y = sine_positional_embedding(x, alpha, x_scale=x_scale)
    y = jax.block_until_ready(y)

    pe_ref = _cached_pe(seq_len, dim_model, "float32", False)
    ref = x * x_scale + alpha[0] * pe_ref[None, :, :]
    assert y.shape == (bs, seq_len, dim_model), y.shape
    assert jnp.allclose(y, ref, atol=1e-5, rtol=1e-5)

    # --- Test 2: bf16, awkward seq_len (ragged block) + dim not 128*k ------
    dim2, bs2, seq2 = 80, 2, 13
    x_scale2 = math.sqrt(dim2)
    key2 = jax.random.PRNGKey(0)
    x2 = jax.random.normal(key2, (bs2, seq2, dim2), dtype=jnp.float32).astype(jnp.bfloat16)
    alpha2 = jnp.asarray([0.75], dtype=jnp.float32)

    y2 = sine_positional_embedding(x2, alpha2, x_scale=x_scale2)
    y2 = jax.block_until_ready(y2)

    pe2 = _cached_pe(seq2, dim2, "bfloat16", False).astype(jnp.float32)
    ref2 = (x2.astype(jnp.float32) * x_scale2 + alpha2[0] * pe2[None, :, :]).astype(jnp.bfloat16)
    assert y2.shape == (bs2, seq2, dim2), y2.shape
    assert jnp.allclose(y2.astype(jnp.float32), ref2.astype(jnp.float32),
                        atol=1e-2, rtol=1e-2)

    print("KERNEL_OK")
</pallas_src>

<mosaic_0001>
module attributes {stable_mosaic.version = 11 : i64} {
  func.func @_sine_pe_kernel(%arg0: i32, %arg1: i32, %arg2: memref<1xf32, #tpu.memory_space<smem>>, %arg3: memref<1x8x128xf32, #tpu.memory_space<vmem>>, %arg4: memref<8x128xf32, #tpu.memory_space<vmem>>, %arg5: memref<1x8x128xf32, #tpu.memory_space<vmem>>) attributes {dimension_semantics = [#tpu.dimension_semantics<parallel>, #tpu.dimension_semantics<parallel>], iteration_bounds = array<i64: 1, 2>, scalar_prefetch = 0 : i64, scratch_operands = 0 : i64, tpu.core_type = #tpu.core_type<tc>, window_params = [{transform_indices = @transform_0, window_bounds = array<i64: 1>}, {transform_indices = @transform_1, window_bounds = array<i64: 1, 8, 128>}, {transform_indices = @transform_2, window_bounds = array<i64: 8, 128>}, {transform_indices = @transform_3, window_bounds = array<i64: 1, 8, 128>}]} {
    %c0 = arith.constant 0 : index
    %0 = memref.load %arg2[%c0] : memref<1xf32, #tpu.memory_space<smem>>
    %c0_0 = arith.constant 0 : index
    %c0_1 = arith.constant 0 : index
    %c0_2 = arith.constant 0 : index
    %1 = vector.load %arg3[%c0_0, %c0_1, %c0_2] : memref<1x8x128xf32, #tpu.memory_space<vmem>>, vector<1x8x128xf32>
    %2 = vector.shape_cast %1 : vector<1x8x128xf32> to vector<8x128xf32>
    %cst = arith.constant 11.3137083 : f32
    %3 = vector.broadcast %cst : f32 to vector<8x128xf32>
    %4 = arith.mulf %2, %3 : vector<8x128xf32>
    %c0_3 = arith.constant 0 : index
    %c0_4 = arith.constant 0 : index
    %5 = vector.load %arg4[%c0_3, %c0_4] : memref<8x128xf32, #tpu.memory_space<vmem>>, vector<8x128xf32>
    %6 = vector.broadcast %0 : f32 to vector<8x128xf32>
    %7 = arith.mulf %6, %5 : vector<8x128xf32>
    %8 = arith.addf %4, %7 : vector<8x128xf32>
    %c0_5 = arith.constant 0 : index
    %c0_6 = arith.constant 0 : index
    %c0_7 = arith.constant 0 : index
    %9 = vector.load %arg5[%c0_5, %c0_6, %c0_7] : memref<1x8x128xf32, #tpu.memory_space<vmem>>, vector<1x8x128xf32>
    %10 = vector.shape_cast %9 : vector<1x8x128xf32> to vector<8x128xf32>
    %11 = vector.shape_cast %8 : vector<8x128xf32> to vector<1x8x128xf32>
    tpu.vector_store %arg5[%c0_5, %c0_6, %c0_7], %11 {strides = array<i32>} : memref<1x8x128xf32, #tpu.memory_space<vmem>>, vector<1x8x128xf32>,
    return
  }
  func.func @transform_0(%arg0: i32, %arg1: i32) -> i32 {
    %c0_i32 = arith.constant 0 : i32
    %c0_i32_0 = arith.constant 0 : i32
    return %c0_i32 : i32
  }
  func.func @transform_1(%arg0: i32, %arg1: i32) -> (i32, i32, i32) {
    %c0_i32 = arith.constant 0 : i32
    %c0_i32_0 = arith.constant 0 : i32
    return %arg1, %arg0, %c0_i32 : i32, i32, i32
  }
  func.func @transform_2(%arg0: i32, %arg1: i32) -> (i32, i32) {
    %c0_i32 = arith.constant 0 : i32
    %c0_i32_0 = arith.constant 0 : i32
    return %arg0, %c0_i32 : i32, i32
  }
  func.func @transform_3(%arg0: i32, %arg1: i32) -> (i32, i32, i32) {
    %c0_i32 = arith.constant 0 : i32
    %c0_i32_0 = arith.constant 0 : i32
    return %arg1, %arg0, %c0_i32 : i32, i32, i32
  }
}

</mosaic_0001>

<bundles_post_ra>
// kernel: tpu_custom_call.1
= control target key start
LH: loop header
LB: loop body
LE: loop exit
PB: predicated region body
PF: predicated region fallthrough
CT: control target
= control target key end

     0   :  { %s815_s0 = inlined_call_operand.<no memory space> [shape: f32[1], index: 0, kind: input, shape index: {}]   ;;  %s816_s1 = inlined_call_operand.hbm [shape: f32[2,8,128], index: 1, kind: input, shape index: {}]   ;;  %s817_s2 = inlined_call_operand.hbm [shape: f32[8,128], index: 2, kind: input, shape index: {}]   ;;  %s818_s3 = inlined_call_operand.hbm [shape: f32[2,8,128], index: 3, kind: output, shape index: {}]  }
   0x1   :  { %8 = sst [smem:[#allocation2]] %s815_s0 }
   0x2   :  { %9 = vsyncpa [#allocation4], 0 }
   0x3   :  { %11 = vsyncpa [#allocation4 + $0x1], 0 }
   0x4   :  { %12 = vsyncpa [#allocation7], 0 }
   0x5   :  { %13 = vsyncpa [#allocation5], 0 }
   0x6   :  { %15 = vsyncpa [#allocation5 + $0x1], 0  ;;  %s599_s14 = smov 0   ;;  %s601_s15 = smov 0  }
   0x7   :  { %s603_s16 = smov 0   ;;  %s605_s17 = smov 0  }
   0x8   :  { %s607_s18 = smov 0   ;;  %s609_s19 = smov 0  }
   0x9 LB: > { %s339_s0 = sadd.s32 4294967295, %s571_s19   ;;  %s340_s20 = sadd.s32 4294967294, %s571_s19   ;;  %s571_s19 = sphi %s609_s19, %s21_s19   ;;  %s567_s18 = sphi %s607_s18, %s843_s18   ;;  %s563_s17 = sphi %s605_s17, %s842_s17   ;;  %s559_s16 = sphi %s603_s16, %s841_s16   ;;  %s555_s15 = sphi %s601_s15, %s840_s15   ;;  %s551_s14 = sphi %s599_s14, %s839_s14  }
   0xa   : > { %p76_p0 = scmp.ne.s32.totalorder %s555_s15, %s551_s14  ;;  %p633_p1 = scmp.eq.s32.totalorder %s339_s0, 0 }
   0xb   : > { %p637_p2 = scmp.eq.s32.totalorder %s339_s0, 1  ;;  %p134_p3 = scmp.eq.s32.totalorder %s340_s20, 1 }
   0xc   : > { %s823_s21 = scalar_select %p633_p1, 1, 0 }
   0xd   : > { %s824_s22 = scalar_select %p637_p2, 1, 0 }
   0xe   : > { %p643_p4 = por %p633_p1, %p76_p0  ;;  %p341_p5 = scmp.ge.s32.totalorder %s571_s19, 1 }
   0xf   : > { %p648_p6 = por %p134_p3, %p76_p0  ;;  %p141_p7 = scmp.lt.s32.totalorder %s571_s19, 3 }
  0x10   : > { %s825_s23 = scalar_select %p643_p4, 1, 0 }
  0x11   : > { %s826_s24 = scalar_select %p648_p6, 1, 0 }
  0x12   : > { %p653_p8 = pnand %p341_p5, %p141_p7  ;;  %s573_s26 = smov [#allocation6]  }
  0x13   : > { %s159_s27 = sshll.u32 %s573_s26, 4  ;;  %s30_s29 = sadd.s32 1, %s567_s18  ;;  %s160_s27 = int_to_ptr.vmem [resolvable:$true] %s159_s27 }
  0x14   : > { %s827_s25 = scalar_select %p653_p8, 1, 0 }
  0x15   : > { %p362_p10 = pneg %p653_p8  ;;  %s63_s30 = sadd.s32 1, %s559_s16 }
  0x16   : > { %p668_p12 = scmp.ge.s32.totalorder %s30_s29, 2  ;;  %s427_s7 = scalar_lea.hbm %s817_s2, 128 }
  0x17   : > { %p662_p11 = pnand %p362_p10, %p633_p1  ;;  %p428_p13 = scmp.ne.s32.totalorder %s817_s2, %s427_s7 }
  0x18   : > { %s829_s4 = scalar_select %p668_p12, 1, 0 }
  0x19   : > { %p429_p0 = pneg %p662_p11  ;;  %p434_p7 = scmp.lt.u32.totalorder %s427_s7, %s817_s2 }
  0x1b   : > { %p430_p3 = pnand %p429_p0, %p428_p13 }
  0x1d   : > { %p431_p5 = pneg %p430_p3 }
  0x1f   : > { %p436_p10 = pnand %p434_p7, %p431_p5 }
  0x21   : > { %439 = shalt.err (!%p436_p10)
}
  0x22   : > { %s440_s12 = scalar_lea.vmem %s160_s27, 128  ;;  %p448_p4 = scmp.lt.s32.totalorder %s160_s27, %s160_s27 }
  0x23   : > { %p441_p9 = scmp.ne.s32.totalorder %s160_s27, %s440_s12  ;;  %p449_p8 = scmp.lt.s32.totalorder %s440_s12, %s440_s12 }
  0x25   : > { %p443_p6 = pnand %p441_p9, %p429_p0  ;;  %p450_p2 = por %p449_p8, %p448_p4 }
  0x27   : > { %p444_p1 = pneg %p443_p6 }
  0x29   : > { %p451_p12 = pnand %p450_p2, %p444_p1 }
  0x2b   : > { %454 = shalt.err (!%p451_p12)
}
  0x2c   : > { %365 = dma.hbm_to_vmem [thread:$0]  (!%p662_p11), %s817_s2, 128, %s160_s27, [#allocation7]  }
  0x2d   : > { %p830_p4 = scmp.ne.s32.totalorder %s829_s4, 0  ;;  %p70_p1 = scmp.ne.s32.totalorder %s559_s16, %s555_s15 }
  0x2e   : > { %p71_p2 = scmp.eq.s32.totalorder %s571_s19, 0  ;;  %p375_p6 = scmp.lt.s32.totalorder %s571_s19, 2 }
  0x2f   : > { %s845_s29 = smov (%p830_p4, %s30_s29), 0  ;;  %p831_p12 = scmp.ne.s32.totalorder %s824_s22, 0 }
  0x30   : > { %s58_s20 = ssub.s32 %s567_s18, %s845_s29  ;;  %p72_p9 = por %p71_p2, %p70_p1 }
  0x31   : > { %p61_p8 = scmp.eq.s32.totalorder %s58_s20, 0  ;;  %p700_p13 = por %p831_p12, %p70_p1 }
  0x32   : > { %s170_s28 = sand.u32 1, %s559_s16   ;;  %s345_s4 = sshll.u32 %s567_s18, 7 }
  0x33   : > { %s708_s5 = scalar_select %p61_p8, %s559_s16, %s63_s30  }
  0x34   : > { %s344_s27 = sshll.u32 %s170_s28, 3  ;;  %s714_s8 = scalar_lea.hbm %s816_s1, %s345_s4 }
  0x35   : > { %s174_s22 = scalar_lea.vmem [#allocation3], %s344_s27  ;;  %p718_p11 = pnand %p375_p6, %p72_p9 }
  0x36   : > { %s182_s9 = sshll.u32 %s174_s22, 4  ;;  %s171_s30 = scalar_lea.sflag [#allocation4], %s170_s28  ;;  %s716_s9 = int_to_ptr.vmem [resolvable:$true] %s182_s9 }
  0x37   : > { %s455_s11 = scalar_lea.hbm %s714_s8, 128  ;;  %p457_p3 = pneg %p718_p11 }
  0x38   : > { %p456_p0 = scmp.ne.s32.totalorder %s714_s8, %s455_s11  ;;  %s460_s0 = scalar_lea.hbm %s816_s1, 256 }
  0x39   : > { %p461_p10 = scmp.lt.u32.totalorder %s714_s8, %s816_s1  ;;  %p462_p4 = scmp.lt.u32.totalorder %s460_s0, %s455_s11 }
  0x3a   : > { %p458_p5 = pnand %p457_p3, %p456_p0  ;;  %p464_p2 = scmp.lt.u32.totalorder %s455_s11, %s714_s8 }
  0x3b   : > { %p463_p1 = por %p462_p4, %p461_p10 }
  0x3c   : > { %p459_p7 = pneg %p458_p5 }
  0x3d   : > { %p465_p6 = por %p464_p2, %p463_p1 }
  0x3f   : > { %p466_p8 = pnand %p465_p6, %p459_p7 }
  0x41   : > { %469 = shalt.err (!%p466_p8)
}
  0x42   : > { %s470_s28 = scalar_lea.vmem %s716_s9, 128  ;;  %s574_s4 = smov [#allocation3]  }
  0x43   : > { %p471_p9 = scmp.ne.s32.totalorder %s716_s9, %s470_s28  ;;  %s475_s6 = sshll.u32 %s574_s4, 4  ;;  %s476_s6 = int_to_ptr.vmem [resolvable:$false] %s475_s6 }
  0x44   : > { %s477_s7 = scalar_lea.vmem %s476_s6, 256  ;;  %p478_p5 = scmp.lt.s32.totalorder %s716_s9, %s476_s6 }
  0x45   : > { %p473_p12 = pnand %p471_p9, %p457_p3  ;;  %p479_p10 = scmp.lt.s32.totalorder %s477_s7, %s470_s28 }
  0x47   : > { %p474_p0 = pneg %p473_p12  ;;  %p480_p4 = por %p479_p10, %p478_p5 }
  0x49   : > { %p481_p1 = pnand %p480_p4, %p474_p0 }
  0x4b   : > { %484 = shalt.err (!%p481_p1)
}
  0x4c   : > { %369 = dma.hbm_to_vmem [thread:$0]  (!%p718_p11), %s714_s8, 128, %s716_s9, %s171_s30  }
  0x4d   : > { %p834_p7 = scmp.ne.s32.totalorder %s827_s25, 0 }
  0x4e   : > { %s750_s22 = sand.u32 (!%p834_p7), 1, %s555_s15   ;;  %p835_p3 = scmp.ne.s32.totalorder (!%p834_p7), %s825_s23, 0 }
  0x4f   : > { %191 = sbr.rel (%p834_p7) target bundleno = 115 (0x73), region = 32  ;;  %s347_s11 = sshll.u32 (!%p834_p7), %s750_s22, 3 }
  0x50   : > { %s194_s12 = scalar_lea.sflag (!%p834_p7), [#allocation4], %s750_s22  ;;  %s197_s13 = scalar_lea.vmem (!%p834_p7), [#allocation3], %s347_s11 }
  0x56   : > { %538 = dma.done.wait (%p835_p3), %s194_s12, 128  }
  0x57   : > { %540 = vsyncadd (%p835_p3), %s194_s12, 4294967168  ;;  %p836_p2 = scmp.ne.s32.totalorder %s823_s21, 0 }
  0x59   : > { %542 = dma.done.wait (%p836_p2), [#allocation7], 128  }
  0x5a   : > { %544 = vsyncadd (%p836_p2), [#allocation7], 4294967168  ;;  %s224_s25 = sld [smem:[#allocation2]]  ;;  %v225_v0 = vld [vmem:[%s197_s13] sm:$0xff]  ;;  %v227_v1 = vld [vmem:[#allocation6] sm:$0xff]  ;;  %s223_s8 = scalar_lea.vmem [#allocation8], %s347_s11 }
  0x5b   : > { %s247_s9 = sshll.u32 %s223_s8, 4  ;;  %s351_s10 = sshll.u32 %s563_s17, 7  ;;  %v226_v3 = vmul.f32 11.313708, %v225_v0  ;;  %s763_s9 = int_to_ptr.vmem [resolvable:$true] %s247_s9 }
  0x5c   : > { %s768_s21 = scalar_lea.hbm %s818_s3, %s351_s10  ;;  %s233_s0 = scalar_lea.sflag [#allocation5], %s750_s22 }
  0x5d   : > { %s485_s20 = scalar_lea.vmem %s763_s9, 128  ;;  %s575_s17 = smov [#allocation8]  }
  0x5e   : > { %p486_p11 = scmp.ne.s32.totalorder %s763_s9, %s485_s20  ;;  %s489_s27 = sshll.u32 %s575_s17, 4  ;;  %s490_s27 = int_to_ptr.vmem [resolvable:$false] %s489_s27 }
  0x5f   : > { %s491_s28 = scalar_lea.vmem %s490_s27, 256  ;;  %p492_p9 = scmp.lt.s32.totalorder %s763_s9, %s490_s27 }
  0x60   : > { %v228_v2 = vstv %s224_s25  ;;  %p487_p6 = pnand %p486_p11, %p700_p13  ;;  %p493_p12 = scmp.lt.s32.totalorder %s491_s28, %s485_s20 }
  0x61   : > { %v229_v4 = vmul.f32 %v228_v2, %v227_v1 }
  0x62   : > { %p488_p8 = pneg %p487_p6  ;;  %p494_p0 = por %p493_p12, %p492_p9 }
  0x63   : > { %v230_v5 = vadd.f32 %v229_v4, %v226_v3 }
  0x64   : > { %p495_p5 = pnand %p494_p0, %p488_p8 }
  0x65   : > { %231 = vst [vmem:[%s223_s8] sm:$0xff] %v230_v5 }
  0x66   : > { %498 = shalt.err (!%p495_p5)
}
  0x67   : > { %s499_s4 = scalar_lea.hbm %s768_s21, 128  ;;  %s503_s22 = scalar_lea.hbm %s818_s3, 256 }
  0x68   : > { %p500_p10 = scmp.ne.s32.totalorder %s768_s21, %s499_s4  ;;  %p504_p7 = scmp.lt.u32.totalorder %s768_s21, %s818_s3 }
  0x69   : > { %p505_p3 = scmp.lt.u32.totalorder %s503_s22, %s499_s4  ;;  %p507_p11 = scmp.lt.u32.totalorder %s499_s4, %s768_s21 }
  0x6a   : > { %p501_p4 = pnand %p500_p10, %p700_p13 }
  0x6b   : > { %p506_p2 = por %p505_p3, %p504_p7 }
  0x6c   : > { %p502_p1 = pneg %p501_p4 }
  0x6d   : > { %p508_p6 = por %p507_p11, %p506_p2 }
  0x6f   : > { %p509_p8 = pnand %p508_p6, %p502_p1 }
  0x71   : > { %512 = shalt.err (!%p509_p8)
}
  0x72   : > { %360 = dma.vmem_to_hbm [thread:$0]  (%p700_p13), %s763_s9, 128, %s768_s21, %s233_s0  }
  0x73 PF: > { %s259_s13 = sand.u32 1, %s551_s14   ;;  %p837_p9 = scmp.ne.s32.totalorder %s826_s24, 0 }
  0x74   : > { %p838_p12 = scmp.ge.s32.totalorder %s571_s19, 2  ;;  %s260_s25 = scalar_lea.sflag [#allocation5], %s259_s13 }
  0x76   : > { %p371_p0 = pnand %p838_p12, %p837_p9 }
  0x78   : > { %546 = dma.done.wait (!%p371_p0), %s260_s25, 128  }
  0x79   : > { %548 = vsyncadd (!%p371_p0), %s260_s25, 4294967168  ;;  %s21_s19 = sadd.s32 1, %s571_s19   ;;  %s839_s14 = smov %s555_s15 }
  0x7a   : > { %p18_p5 = scmp.ge.s32.totalorder %s21_s19, 4   ;;  %s840_s15 = smov %s559_s16 }
  0x7b   : > { %s841_s16 = smov %s708_s5  ;;  %s842_s17 = smov %s567_s18 }
  0x7c   : > { %s843_s18 = smov %s845_s29  ;;  %20 = sbr.rel (!%p18_p5) target bundleno = 9 (0x9), region = 82 }
  0x83   :  { %265 = vsyncpa [#allocation4], 1 }
  0x84   :  { %267 = vsyncpa [#allocation4 + $0x1], 1 }
  0x85   :  { %268 = vsyncpa [#allocation7], 1 }
  0x86   :  { %269 = vsyncpa [#allocation5], 1 }
  0x87   :  { %271 = vsyncpa [#allocation5 + $0x1], 1 }

</bundles_post_ra>
